<compile_context>
chip_gen: v7x
topology: tpu7x:2x2x1
jax: 0.10.0
libtpu: 0.0.40
codegen_flags: <defaults>
</compile_context>

<pallas_src>
import jax
import jax.numpy as jnp
from jax.experimental import pallas as pl
from jax.experimental.pallas import tpu as pltpu

# ---- synthetic Config (mirrors the `Config` referenced by the PyTorch code) ----
EMBED_SIZE   = 32
FILTER_NUM   = 8
FILTER_SIZES = (2, 3, 4)
DROPOUT      = 0.5           # inference mode -> identity
VOCAB_SIZE   = 100
TAG_SIZE     = 4
BATCH        = 2
SEQ_LEN      = 16

MAX_FSZ = max(FILTER_SIZES)
C_REAL  = len(FILTER_SIZES) * FILTER_NUM            # 24 real filter columns
C_PAD   = ((C_REAL + 127) // 128) * 128             # lane-dense (128)
V_PAD   = ((VOCAB_SIZE + 127) // 128) * 128         # lane-dense one-hot width


def textcnn_kernel(tok_ref, tab_ref, wc_ref, bc_ref, mask_ref, wl_ref, bl_ref,
                   out_ref):
    """Embedding gather + convs + ReLU + masked max-pool + linear for one batch block."""
    tok = tok_ref[...]                                   # (bt, S, 1) int32
    bt, S, _ = tok.shape
    V = tab_ref.shape[0]

    # ---- in-kernel embedding gather: lane-broadcast compare + MXU matmul ----
    vocab_iota = jax.lax.broadcasted_iota(jnp.int32, (bt, S, V), 2)
    onehot = jnp.where(vocab_iota == tok, 1.0, 0.0).astype(jnp.bfloat16)
    emb = jax.lax.dot_general(                           # (bt, S, E) f32, exact
        onehot, tab_ref[...],
        dimension_numbers=(((2,), (0,)), ((), ())),
        preferred_element_type=jnp.float32)

    # ---- conv taps: roll the narrow f32 gather output, accumulate in f32 ----
    # TODO(synk): merge the MAX_FSZ taps into one K=MAX_FSZ*E matmul via a
    # lane-axis im2col concat once minor-dim bf16 concat relayout cost is verified.
    def tap(i):
        src = emb if i == 0 else pltpu.roll(emb, shift=S - i, axis=1)
        return jax.lax.dot_general(                      # (bt, S, C_PAD) f32
            src.astype(jnp.bfloat16), wc_ref[i],
            dimension_numbers=(((2,), (0,)), ((), ())),
            preferred_element_type=jnp.float32)

    acc = tap(0)                                         # tap 0 initializes acc
    for i in range(1, MAX_FSZ):                          # static unroll over taps
        acc = acc + tap(i)

    # Bias + ReLU in f32; zero invalid time steps / roll wrap / padded columns.
    # (ReLU output >= 0, so masking to 0 before the max is exact.)
    acc = jnp.maximum(acc + bc_ref[...][None, :, :], 0.0)
    acc = acc * mask_ref[...][None, :, :]
    feat = jnp.max(acc, axis=1)                          # (bt, C_PAD) max-pool over time

    # TODO(synk): nn.Dropout is identity at inference; no RNG mask applied here.

    # Fused "concat + linear": padded wl rows are zero, so no effect.
    logits = jax.lax.dot_general(
        feat.astype(jnp.bfloat16), wl_ref[...],
        dimension_numbers=(((1,), (0,)), ((), ())),
        preferred_element_type=jnp.float32)
    out_ref[...] = logits + bl_ref[...]                  # (bt, TAG_SIZE) f32


def fuse_params(params, seq_len):
    """Host-side one-time padding/fusion of table + per-branch conv + linear params."""
    assert seq_len >= MAX_FSZ, (
        "SEQ_LEN must be >= max(FILTER_SIZES); the PyTorch Conv2d would fail too.")
    table = jnp.zeros((V_PAD, EMBED_SIZE), jnp.float32).at[:VOCAB_SIZE].set(
        params["embedding"])
    wc   = jnp.zeros((MAX_FSZ, EMBED_SIZE, C_PAD), jnp.float32)
    bc   = jnp.zeros((1, C_PAD), jnp.float32)
    mask = jnp.zeros((seq_len, C_PAD), jnp.float32)
    for k, fsz in enumerate(FILTER_SIZES):
        c0 = k * FILTER_NUM
        wc   = wc.at[:fsz, :, c0:c0 + FILTER_NUM].set(params[f"w{k + 1}"])
        bc   = bc.at[:, c0:c0 + FILTER_NUM].set(params[f"b{k + 1}"])
        mask = mask.at[:seq_len - fsz + 1, c0:c0 + FILTER_NUM].set(1.0)
    wl = jnp.zeros((C_PAD, TAG_SIZE), jnp.float32).at[:C_REAL, :].set(params["wl"])
    return {
        "table": table.astype(jnp.bfloat16),   # VMEM-resident bf16 embedding table
        "wc": wc.astype(jnp.bfloat16),
        "bc": bc,                              # f32 bias
        "mask": mask,                          # f32 validity mask
        "wl": wl.astype(jnp.bfloat16),
        "bl": params["bl"],                    # f32 bias
    }


def _pick_batch_tile(B):
    """Big tiles amortize the ~0.35us/step pipeline overhead; the cap keeps the
    f32 (bt,S,C_PAD) accumulator + bf16 one-hot inside a ~48 MiB scoped-VMEM
    budget (v7x-safe, 64 MiB physical), and at real batch sizes the grid has
    >= 2 steps so ("parallel",) can shard across v7x's two TensorCores."""
    if B <= 16:
        return B
    bt = min(512, (B + 1) // 2)
    return max(8, (bt // 8) * 8)


def textcnn_forward(tokens, fused):
    B, S = tokens.shape
    tok3 = tokens.reshape(B, S, 1).astype(jnp.int32)     # free host reshape
    bt = _pick_batch_tile(B)
    grid = (pl.cdiv(B, bt),)

    def resident(shape):
        return pl.BlockSpec(shape, lambda i, _n=len(shape): (0,) * _n)

    cost = pl.CostEstimate(
        flops=2 * B * S * (V_PAD * EMBED_SIZE + MAX_FSZ * EMBED_SIZE * C_PAD)
              + 2 * B * C_PAD * TAG_SIZE,
        transcendentals=0,
        bytes_accessed=(B * S * 4 + B * TAG_SIZE * 4
                        + V_PAD * EMBED_SIZE * 2
                        + MAX_FSZ * EMBED_SIZE * C_PAD * 2
                        + (1 + S) * C_PAD * 4
                        + C_PAD * TAG_SIZE * 2 + TAG_SIZE * 4))

    return pl.pallas_call(
        textcnn_kernel,
        out_shape=jax.ShapeDtypeStruct((B, TAG_SIZE), jnp.float32),
        grid=grid,
        in_specs=[
            pl.BlockSpec((bt, S, 1), lambda i: (i, 0, 0)),     # tokens (blocked)
            resident((V_PAD, EMBED_SIZE)),                     # embedding table
            resident((MAX_FSZ, EMBED_SIZE, C_PAD)),            # fused conv weights
            resident((1, C_PAD)),                              # fused conv bias
            resident((S, C_PAD)),                              # validity mask
            resident((C_PAD, TAG_SIZE)),                       # linear weight
            resident((1, TAG_SIZE)),                           # linear bias
        ],
        out_specs=pl.BlockSpec((bt, TAG_SIZE), lambda i: (i, 0)),
        compiler_params=pltpu.CompilerParams(
            dimension_semantics=("parallel",),
            vmem_limit_bytes=48 * 1024 * 1024),
        cost_estimate=cost,
    )(tok3, fused["table"], fused["wc"], fused["bc"], fused["mask"],
      fused["wl"], fused["bl"])


def reference_forward(tokens, params):
    """Pure-JAX reference of the PyTorch forward (eval mode), bf16 MXU inputs."""
    emb = params["embedding"].astype(jnp.bfloat16)[tokens]      # (B, S, E)
    S = emb.shape[1]
    feats = []
    for k, fsz in enumerate(FILTER_SIZES):
        w = params[f"w{k + 1}"].astype(jnp.bfloat16)
        b = params[f"b{k + 1}"]
        L = S - fsz + 1
        acc = None
        for i in range(fsz):
            p = jax.lax.dot_general(
                emb[:, i:i + L, :], w[i],
                dimension_numbers=(((2,), (0,)), ((), ())),
                preferred_element_type=jnp.float32)
            acc = p if acc is None else acc + p
        acc = jnp.maximum(acc + b[None, :, :], 0.0)
        feats.append(jnp.max(acc, axis=1))
    feat = jnp.concatenate(feats, axis=1)                        # (B, 3F)
    return jax.lax.dot_general(
        feat.astype(jnp.bfloat16), params["wl"].astype(jnp.bfloat16),
        dimension_numbers=(((1,), (0,)), ((), ())),
        preferred_element_type=jnp.float32) + params["bl"]


def init_params(key):
    ks = jax.random.split(key, 9)
    return {
        "embedding": 0.1 * jax.random.normal(ks[0], (VOCAB_SIZE, EMBED_SIZE), jnp.float32),
        "w1": 0.1 * jax.random.normal(ks[1], (FILTER_SIZES[0], EMBED_SIZE, FILTER_NUM), jnp.float32),
        "b1": 0.1 * jax.random.normal(ks[2], (1, FILTER_NUM), jnp.float32),
        "w2": 0.1 * jax.random.normal(ks[3], (FILTER_SIZES[1], EMBED_SIZE, FILTER_NUM), jnp.float32),
        "b2": 0.1 * jax.random.normal(ks[4], (1, FILTER_NUM), jnp.float32),
        "w3": 0.1 * jax.random.normal(ks[5], (FILTER_SIZES[2], EMBED_SIZE, FILTER_NUM), jnp.float32),
        "b3": 0.1 * jax.random.normal(ks[6], (1, FILTER_NUM), jnp.float32),
        "wl": 0.1 * jax.random.normal(ks[7], (C_REAL, TAG_SIZE), jnp.float32),
        "bl": 0.1 * jax.random.normal(ks[8], (1, TAG_SIZE), jnp.float32),
    }


if __name__ == "__main__":
    root = jax.random.PRNGKey(0)
    k_params, k_tok = jax.random.split(root)
    params = init_params(k_params)
    tokens = jax.random.randint(k_tok, (BATCH, SEQ_LEN), 0, VOCAB_SIZE, dtype=jnp.int32)

    fused = fuse_params(params, SEQ_LEN)
    logits = textcnn_forward(tokens, fused)
    jax.block_until_ready(logits)

    ref = reference_forward(tokens, params)
    assert logits.shape == (BATCH, TAG_SIZE)
    assert jnp.allclose(logits, ref, atol=2e-3, rtol=2e-3), \
        "Pallas kernel mismatch vs reference"

    print("KERNEL_OK")
</pallas_src>

<mosaic_0001>
module attributes {stable_mosaic.version = 11 : i64} {
  func.func @textcnn_kernel(%arg0: i32, %arg1: memref<2x16x1xi32, #tpu.memory_space<vmem>>, %arg2: memref<128x32xbf16, #tpu.memory_space<vmem>>, %arg3: memref<4x32x128xbf16, #tpu.memory_space<vmem>>, %arg4: memref<1x128xf32, #tpu.memory_space<vmem>>, %arg5: memref<16x128xf32, #tpu.memory_space<vmem>>, %arg6: memref<128x4xbf16, #tpu.memory_space<vmem>>, %arg7: memref<1x4xf32, #tpu.memory_space<vmem>>, %arg8: memref<2x4xf32, #tpu.memory_space<vmem>>) attributes {dimension_semantics = [#tpu.dimension_semantics<parallel>], iteration_bounds = array<i64: 1>, scalar_prefetch = 0 : i64, scratch_operands = 0 : i64, tpu.core_type = #tpu.core_type<tc>, window_params = [{transform_indices = @transform_0, window_bounds = array<i64: 2, 16, 1>}, {pipeline_mode = #tpu.pipeline_mode<synchronous>, transform_indices = @transform_1, window_bounds = array<i64: 128, 32>}, {pipeline_mode = #tpu.pipeline_mode<synchronous>, transform_indices = @transform_2, window_bounds = array<i64: 4, 32, 128>}, {pipeline_mode = #tpu.pipeline_mode<synchronous>, transform_indices = @transform_3, window_bounds = array<i64: 1, 128>}, {pipeline_mode = #tpu.pipeline_mode<synchronous>, transform_indices = @transform_4, window_bounds = array<i64: 16, 128>}, {pipeline_mode = #tpu.pipeline_mode<synchronous>, transform_indices = @transform_5, window_bounds = array<i64: 128, 4>}, {pipeline_mode = #tpu.pipeline_mode<synchronous>, transform_indices = @transform_6, window_bounds = array<i64: 1, 4>}, {transform_indices = @transform_7, window_bounds = array<i64: 2, 4>}]} {
    %c0 = arith.constant 0 : index
    %c0_0 = arith.constant 0 : index
    %c0_1 = arith.constant 0 : index
    %0 = vector.load %arg1[%c0, %c0_0, %c0_1] : memref<2x16x1xi32, #tpu.memory_space<vmem>>, vector<2x16x1xi32>
    %1 = tpu.iota {dimensions = array<i32: 2>} : vector<2x16x128xi32>
    %2 = vector.broadcast %0 : vector<2x16x1xi32> to vector<2x16x128xi32>
    %3 = arith.cmpi eq, %1, %2 : vector<2x16x128xi32>
    %cst = arith.constant 1.000000e+00 : f32
    %cst_2 = arith.constant 0.000000e+00 : f32
    %4 = vector.broadcast %cst : f32 to vector<2x16x128xf32>
    %5 = vector.broadcast %cst_2 : f32 to vector<2x16x128xf32>
    %6 = arith.select %3, %4, %5 : vector<2x16x128xi1>, vector<2x16x128xf32>
    %7 = arith.truncf %6 : vector<2x16x128xf32> to vector<2x16x128xbf16>
    %c0_3 = arith.constant 0 : index
    %c0_4 = arith.constant 0 : index
    %8 = vector.load %arg2[%c0_3, %c0_4] : memref<128x32xbf16, #tpu.memory_space<vmem>>, vector<128x32xbf16>
    %cst_5 = arith.constant dense<0.000000e+00> : vector<2x16x32xf32>
    %9 = tpu.matmul %7, %8, %cst_5 {dimension_numbers = #tpu.dot_dimension_numbers<[2], [0], [0, 1], [1], [0, 0, 0, 1, 1, 1], [], []>} : vector<2x16x128xbf16>, vector<128x32xbf16>, vector<2x16x32xf32> -> vector<2x16x32xf32>
    %10 = arith.truncf %9 : vector<2x16x32xf32> to vector<2x16x32xbf16>
    %c0_6 = arith.constant 0 : index
    %c0_7 = arith.constant 0 : index
    %c0_8 = arith.constant 0 : index
    %11 = vector.load %arg3[%c0_6, %c0_7, %c0_8] : memref<4x32x128xbf16, #tpu.memory_space<vmem>>, vector<1x32x128xbf16>
    %12 = vector.shape_cast %11 : vector<1x32x128xbf16> to vector<32x128xbf16>
    %cst_9 = arith.constant dense<0.000000e+00> : vector<2x16x128xf32>
    %13 = tpu.matmul %10, %12, %cst_9 {dimension_numbers = #tpu.dot_dimension_numbers<[2], [0], [0, 1], [1], [0, 0, 0, 1, 1, 1], [], []>} : vector<2x16x32xbf16>, vector<32x128xbf16>, vector<2x16x128xf32> -> vector<2x16x128xf32>
    %c15_i32 = arith.constant 15 : i32
    %14 = tpu.dynamic_rotate %9 by %c15_i32 dim 1 : vector<2x16x32xf32>, i32 -> vector<2x16x32xf32>
    %15 = arith.truncf %14 : vector<2x16x32xf32> to vector<2x16x32xbf16>
    %c1 = arith.constant 1 : index
    %c0_10 = arith.constant 0 : index
    %c0_11 = arith.constant 0 : index
    %16 = vector.load %arg3[%c1, %c0_10, %c0_11] : memref<4x32x128xbf16, #tpu.memory_space<vmem>>, vector<1x32x128xbf16>
    %17 = vector.shape_cast %16 : vector<1x32x128xbf16> to vector<32x128xbf16>
    %cst_12 = arith.constant dense<0.000000e+00> : vector<2x16x128xf32>
    %18 = tpu.matmul %15, %17, %cst_12 {dimension_numbers = #tpu.dot_dimension_numbers<[2], [0], [0, 1], [1], [0, 0, 0, 1, 1, 1], [], []>} : vector<2x16x32xbf16>, vector<32x128xbf16>, vector<2x16x128xf32> -> vector<2x16x128xf32>
    %19 = arith.addf %13, %18 : vector<2x16x128xf32>
    %c14_i32 = arith.constant 14 : i32
    %20 = tpu.dynamic_rotate %9 by %c14_i32 dim 1 : vector<2x16x32xf32>, i32 -> vector<2x16x32xf32>
    %21 = arith.truncf %20 : vector<2x16x32xf32> to vector<2x16x32xbf16>
    %c2 = arith.constant 2 : index
    %c0_13 = arith.constant 0 : index
    %c0_14 = arith.constant 0 : index
    %22 = vector.load %arg3[%c2, %c0_13, %c0_14] : memref<4x32x128xbf16, #tpu.memory_space<vmem>>, vector<1x32x128xbf16>
    %23 = vector.shape_cast %22 : vector<1x32x128xbf16> to vector<32x128xbf16>
    %cst_15 = arith.constant dense<0.000000e+00> : vector<2x16x128xf32>
    %24 = tpu.matmul %21, %23, %cst_15 {dimension_numbers = #tpu.dot_dimension_numbers<[2], [0], [0, 1], [1], [0, 0, 0, 1, 1, 1], [], []>} : vector<2x16x32xbf16>, vector<32x128xbf16>, vector<2x16x128xf32> -> vector<2x16x128xf32>
    %25 = arith.addf %19, %24 : vector<2x16x128xf32>
    %c13_i32 = arith.constant 13 : i32
    %26 = tpu.dynamic_rotate %9 by %c13_i32 dim 1 : vector<2x16x32xf32>, i32 -> vector<2x16x32xf32>
    %27 = arith.truncf %26 : vector<2x16x32xf32> to vector<2x16x32xbf16>
    %c3 = arith.constant 3 : index
    %c0_16 = arith.constant 0 : index
    %c0_17 = arith.constant 0 : index
    %28 = vector.load %arg3[%c3, %c0_16, %c0_17] : memref<4x32x128xbf16, #tpu.memory_space<vmem>>, vector<1x32x128xbf16>
    %29 = vector.shape_cast %28 : vector<1x32x128xbf16> to vector<32x128xbf16>
    %cst_18 = arith.constant dense<0.000000e+00> : vector<2x16x128xf32>
    %30 = tpu.matmul %27, %29, %cst_18 {dimension_numbers = #tpu.dot_dimension_numbers<[2], [0], [0, 1], [1], [0, 0, 0, 1, 1, 1], [], []>} : vector<2x16x32xbf16>, vector<32x128xbf16>, vector<2x16x128xf32> -> vector<2x16x128xf32>
    %31 = arith.addf %25, %30 : vector<2x16x128xf32>
    %c0_19 = arith.constant 0 : index
    %c0_20 = arith.constant 0 : index
    %32 = vector.load %arg4[%c0_19, %c0_20] : memref<1x128xf32, #tpu.memory_space<vmem>>, vector<1x128xf32>
    %33 = vector.shape_cast %32 : vector<1x128xf32> to vector<1x1x128xf32>
    %34 = vector.broadcast %33 : vector<1x1x128xf32> to vector<2x16x128xf32>
    %35 = arith.addf %31, %34 : vector<2x16x128xf32>
    %cst_21 = arith.constant 0.000000e+00 : f32
    %36 = vector.broadcast %cst_21 : f32 to vector<2x16x128xf32>
    %37 = arith.maximumf %35, %36 : vector<2x16x128xf32>
    %c0_22 = arith.constant 0 : index
    %c0_23 = arith.constant 0 : index
    %38 = vector.load %arg5[%c0_22, %c0_23] : memref<16x128xf32, #tpu.memory_space<vmem>>, vector<16x128xf32>
    %39 = vector.shape_cast %38 : vector<16x128xf32> to vector<1x16x128xf32>
    %40 = vector.broadcast %39 : vector<1x16x128xf32> to vector<2x16x128xf32>
    %41 = arith.mulf %37, %40 : vector<2x16x128xf32>
    %cst_24 = arith.constant dense<0xFF800000> : vector<2x128xf32>
    %42 = vector.multi_reduction <maximumf>, %41, %cst_24 [1] : vector<2x16x128xf32> to vector<2x128xf32>
    %43 = arith.truncf %42 : vector<2x128xf32> to vector<2x128xbf16>
    %c0_25 = arith.constant 0 : index
    %c0_26 = arith.constant 0 : index
    %44 = vector.load %arg6[%c0_25, %c0_26] : memref<128x4xbf16, #tpu.memory_space<vmem>>, vector<128x4xbf16>
    %cst_27 = arith.constant dense<0.000000e+00> : vector<2x4xf32>
    %45 = tpu.matmul %43, %44, %cst_27 {dimension_numbers = #tpu.dot_dimension_numbers<[1], [0], [0], [1], [0, 0, 1, 1], [], []>} : vector<2x128xbf16>, vector<128x4xbf16>, vector<2x4xf32> -> vector<2x4xf32>
    %c0_28 = arith.constant 0 : index
    %c0_29 = arith.constant 0 : index
    %46 = vector.load %arg7[%c0_28, %c0_29] : memref<1x4xf32, #tpu.memory_space<vmem>>, vector<1x4xf32>
    %47 = vector.broadcast %46 : vector<1x4xf32> to vector<2x4xf32>
    %48 = arith.addf %45, %47 : vector<2x4xf32>
    %c0_30 = arith.constant 0 : index
    %c0_31 = arith.constant 0 : index
    %49 = vector.load %arg8[%c0_30, %c0_31] : memref<2x4xf32, #tpu.memory_space<vmem>>, vector<2x4xf32>
    tpu.vector_store %arg8[%c0_30, %c0_31], %48 {strides = array<i32>} : memref<2x4xf32, #tpu.memory_space<vmem>>, vector<2x4xf32>,
    return
  }
  func.func @transform_0(%arg0: i32) -> (i32, i32, i32) {
    %c0_i32 = arith.constant 0 : i32
    %c0_i32_0 = arith.constant 0 : i32
    %c0_i32_1 = arith.constant 0 : i32
    return %arg0, %c0_i32, %c0_i32_0 : i32, i32, i32
  }
  func.func @transform_1(%arg0: i32) -> (i32, i32) {
    %c0_i32 = arith.constant 0 : i32
    %c0_i32_0 = arith.constant 0 : i32
    %c0_i32_1 = arith.constant 0 : i32
    return %c0_i32, %c0_i32_0 : i32, i32
  }
  func.func @transform_2(%arg0: i32) -> (i32, i32, i32) {
    %c0_i32 = arith.constant 0 : i32
    %c0_i32_0 = arith.constant 0 : i32
    %c0_i32_1 = arith.constant 0 : i32
    %c0_i32_2 = arith.constant 0 : i32
    return %c0_i32, %c0_i32_0, %c0_i32_1 : i32, i32, i32
  }
  func.func @transform_3(%arg0: i32) -> (i32, i32) {
    %c0_i32 = arith.constant 0 : i32
    %c0_i32_0 = arith.constant 0 : i32
    %c0_i32_1 = arith.constant 0 : i32
    return %c0_i32, %c0_i32_0 : i32, i32
  }
  func.func @transform_4(%arg0: i32) -> (i32, i32) {
    %c0_i32 = arith.constant 0 : i32
    %c0_i32_0 = arith.constant 0 : i32
    %c0_i32_1 = arith.constant 0 : i32
    return %c0_i32, %c0_i32_0 : i32, i32
  }
  func.func @transform_5(%arg0: i32) -> (i32, i32) {
    %c0_i32 = arith.constant 0 : i32
    %c0_i32_0 = arith.constant 0 : i32
    %c0_i32_1 = arith.constant 0 : i32
    return %c0_i32, %c0_i32_0 : i32, i32
  }
  func.func @transform_6(%arg0: i32) -> (i32, i32) {
    %c0_i32 = arith.constant 0 : i32
    %c0_i32_0 = arith.constant 0 : i32
    %c0_i32_1 = arith.constant 0 : i32
    return %c0_i32, %c0_i32_0 : i32, i32
  }
  func.func @transform_7(%arg0: i32) -> (i32, i32) {
    %c0_i32 = arith.constant 0 : i32
    %c0_i32_0 = arith.constant 0 : i32
    return %arg0, %c0_i32 : i32, i32
  }
}

</mosaic_0001>

<bundles_post_ra>
// kernel: tpu_custom_call.1
= control target key start
LH: loop header
LB: loop body
LE: loop exit
PB: predicated region body
PF: predicated region fallthrough
CT: control target
= control target key end

     0   :  { %v898_v2 = vmov 0   ;;  %s1080_s0 = inlined_call_operand.vmem [shape: s32[2,16,1], index: 0, kind: input, shape index: {}]   ;;  %s1081_s1 = inlined_call_operand.vmem [shape: bf16[128,32], index: 1, kind: input, shape index: {}]   ;;  %s1082_s2 = inlined_call_operand.vmem [shape: bf16[4,32,128], index: 2, kind: input, shape index: {}]   ;;  %s1083_s3 = inlined_call_operand.vmem [shape: f32[1,128], index: 3, kind: input, shape index: {}]   ;;  %s1084_s4 = inlined_call_operand.vmem [shape: f32[16,128], index: 4, kind: input, shape index: {}]   ;;  %s1085_s5 = inlined_call_operand.vmem [shape: bf16[128,4], index: 5, kind: input, shape index: {}]   ;;  %s1086_s6 = inlined_call_operand.vmem [shape: f32[1,4], index: 6, kind: input, shape index: {}]   ;;  %s1087_s7 = inlined_call_operand.hbm [shape: f32[2,4], index: 7, kind: output, shape index: {}]  }
   0x1   :  { %v30_v0 = vld [vmem:[%s1080_s0 + $0x10] sm:$0xff]  ;;  %v28_v1 = vld [vmem:[%s1080_s0] sm:$0xff]  ;;  %849 = vset.pattern.permute.xlu1 %v898_v2  ;;  %848 = vset.pattern.permute.xlu0 %v898_v2  ;;  %v31_v3 = vld [vmem:[%s1080_s0 + $0x18] sm:$0xff] }
   0x2   :  { %v29_v4 = vld [vmem:[%s1080_s0 + $0x8] sm:$0xff]  ;;  %41 = vperm.xlu1 %849, %v30_v0   ;;  %35 = vperm.xlu0 %848, %v28_v1   ;;  %v850_v5 = vld [vmem:[%s1081_s1] sm:$0xff]   ;;  %v852_v7 = vld [vmem:[%s1081_s1 + $0x10] sm:$0xff]  }
   0x3   :  { %v851_v6 = vld [vmem:[%s1081_s1 + $0x8] sm:$0xff]   ;;  %759 = vmatprep.subr.bf16.mxu0 %v850_v5  ;;  %v853_v8 = vld [vmem:[%s1081_s1 + $0x18] sm:$0xff]   ;;  %v854_v9 = vld [vmem:[%s1081_s1 + $0x20] sm:$0xff]  }
   0x4   :  { %760 = vmatpush3.bf16.msra.mxu0 %v850_v5  ;;  %v855_v10 = vld [vmem:[%s1081_s1 + $0x28] sm:$0xff]  }
   0x5   :  { %761 = vmatprep.subr.bf16.mxu0 %v851_v6 }
   0x6   :  { %44 = vperm.xlu1 %849, %v31_v3   ;;  %38 = vperm.xlu0 %848, %v29_v4  }
   0x8   :  { %762 = vmatpush3.bf16.msra.mxu0 %v851_v6 }
   0x9   :  { %763 = vmatprep.subr.bf16.mxu0 %v852_v7 }
   0xc   :  { %764 = vmatpush3.bf16.msra.mxu0 %v852_v7 }
   0xd   :  { %765 = vmatprep.subr.bf16.mxu0 %v853_v8 }
  0x10   :  { %766 = vmatpush3.bf16.msra.mxu0 %v853_v8 }
  0x11   :  { %767 = vmatprep.subr.bf16.mxu0 %v854_v9 }
  0x12   :  { %12 = vsyncpa [#allocation3], 0  ;;  %v856_v11 = vld [vmem:[%s1081_s1 + $0x30] sm:$0xff]   ;;  %v857_v12 = vld [vmem:[%s1081_s1 + $0x38] sm:$0xff]   ;;  %v32_v13 = vlaneseq  ;;  %v899_v19 = vmov 1.0|1.0  }
  0x13   :  { %v858_v20 = vld [vmem:[%s1082_s2 + $0x10] sm:$0xff]   ;;  %v859_v21 = vld [vmem:[%s1082_s2 + $0x18] sm:$0xff]   ;;  %v860_v22 = vld [vmem:[%s1082_s2] sm:$0xff]   ;;  %v900_v23 = vmov 0.0   ;;  %vm205_vm9 = vcmask 261120   ;;  %vm901_vm10 = vmmov 0  }
  0x14   :  { %768 = vmatpush3.bf16.msra.mxu0 %v854_v9  ;;  %v33_v16 = vand.u32 127, %v32_v13  ;;  %779 = vmatprep.subr.bf16.mxu1 %v858_v20  ;;  %v180_v24 = vshrl.u32 %v32_v13, 7  ;;  %v861_v56 = vld [vmem:[%s1082_s2 + $0x8] sm:$0xff]   ;;  %v862_v62 = vld [vmem:[%s1082_s2 + $0x20] sm:$0xff]   ;;  %v864_v0 = vld [vmem:[%s1082_s2 + $0x30] sm:$0xff]   ;;  %vm566_vm11 = vcmask 1041409  }
  0x15   :  { %769 = vmatprep.subr.bf16.mxu0 %v855_v10  ;;  %780 = vmatpush3.bf16.msra.mxu1 %v858_v20  ;;  %v863_v63 = vld [vmem:[%s1082_s2 + $0x28] sm:$0xff]   ;;  %v865_v1 = vld [vmem:[%s1082_s2 + $0x38] sm:$0xff]   ;;  %v866_v2 = vld [vmem:[%s1085_s5] sm:$0xff]   ;;  %s902_s11 = smov [#allocation2]   ;;  %vm658_vm12 = vcmask 25600  }
  0x16   :  { %781 = vmatprep.subr.bf16.mxu1 %v859_v21  ;;  %vm332_vm6 = vcmp.lt.s32.totalorder %v180_v24, 6  ;;  %vm419_vm7 = vcmp.lt.s32.totalorder %v180_v24, 5  ;;  %vm181_vm8 = vcmp.lt.s32.totalorder %v180_v24, 7  ;;  %v867_v3 = vld [vmem:[%s1085_s5 + $0x8] sm:$0xff]   ;;  %v868_v4 = vld [vmem:[%s1085_s5 + $0x10] sm:$0xff]   ;;  %v869_v5 = vld [vmem:[%s1085_s5 + $0x18] sm:$0xff]  }
  0x17   :  { %v870_v6 = vld [vmem:[%s1085_s5 + $0x20] sm:$0xff]   ;;  %v871_v7 = vld [vmem:[%s1085_s5 + $0x28] sm:$0xff]   ;;  %v872_v8 = vld [vmem:[%s1085_s5 + $0x30] sm:$0xff]   ;;  %s666_s12 = sshll.u32 %s902_s11, 4  ;;  %s667_s12 = int_to_ptr.vmem [resolvable:$true] %s666_s12 }
  0x18   :  { %770 = vmatpush3.bf16.msra.mxu0 %v855_v10  ;;  %v873_v9 = vld [vmem:[%s1085_s5 + $0x38] sm:$0xff]   ;;  %v714_v10 = vld [vmem:[%s1083_s3] ss:$0 sm:$0xff]  ;;  %s874_s13 = scalar_lea.vmem %s667_s12, 32  ;;  %p879_p1 = scmp.lt.s32.totalorder %s667_s12, %s667_s12 }
  0x19   :  { %771 = vmatprep.subr.bf16.mxu0 %v856_v11  ;;  %782 = vmatpush3.bf16.msra.mxu1 %v859_v21  ;;  %v518_v21 = vld [vmem:[%s1084_s4 + $0x8] sm:$0xff]  ;;  %p875_p0 = scmp.ne.s32.totalorder %s667_s12, %s874_s13  ;;  %p880_p2 = scmp.lt.s32.totalorder %s874_s13, %s874_s13 }
  0x1a   :  { %787 = vmatprep.subr.bf16.mxu1 %v860_v22 }
  0x1b   :  { %p881_p3 = por %p880_p2, %p879_p1 }
  0x1c   :  { %772 = vmatpush3.bf16.msra.mxu0 %v856_v11 }
  0x1d   :  { %773 = vmatprep.subr.bf16.mxu0 %v857_v12  ;;  %p882_p4 = pnand %p881_p3, %p875_p0 }
  0x20   :  { %774 = vmatpush3.bf16.msra.mxu0 %v857_v12 }
  0x21   :  { %811 = vmatprep.subr.bf16.mxu0 %v900_v23 }
  0x81   :  { %v42_v14 = vpop.permute.xlu1 %41  ;;  %v36_v15 = vpop.permute.xlu0 %35 }
  0x82   :  { %vm48_vm0 = vcmp.eq.s32.totalorder %v33_v16, %v42_v14  ;;  %vm46_vm3 = vcmp.eq.s32.totalorder %v33_v16, %v36_v15 }
  0x85   :  { %v45_v17 = vpop.permute.xlu1 %44  ;;  %v39_v18 = vpop.permute.xlu0 %38 }
  0x86   :  { %vm49_vm1 = vcmp.eq.s32.totalorder %v33_v16, %v45_v17  ;;  %vm47_vm2 = vcmp.eq.s32.totalorder %v33_v16, %v39_v18 }
  0x87   :  { %vm684_vm4 = vmpackc.low %vm49_vm1, %vm48_vm0 }
  0x88   :  { %vm682_vm5 = vmpackc.low %vm47_vm2, %vm46_vm3 }
  0x89   :  { %775 = vmatprep.mubr.msk.bf16.mxu0 %vm682_vm5, %v899_v19 }
  0x8a   :  { %776 = vmatmul.mubr.msk.bf16.vlgmr.msra.gmra.mrb[0].mxu0 %vm684_vm4, %v899_v19  ;;  %v517_v19 = vld [vmem:[%s1084_s4] sm:$0xff] }
  0x8b   :  { %812 = vmatpush3.bf16.msra.mxu0 %v866_v2  ;;  %827 = vmatprep.mubr.msk.bf16.mxu0 %vm901_vm10, %v900_v23 }
  0x8c   :  { %813 = vmatprep.subr.bf16.mxu0 %v900_v23 }
  0x8f   :  { %814 = vmatpush3.bf16.msra.mxu0 %v867_v3 }
  0x90   :  { %815 = vmatprep.subr.bf16.mxu0 %v900_v23 }
  0x93   :  { %816 = vmatpush3.bf16.msra.mxu0 %v868_v4 }
  0x94   :  { %817 = vmatprep.subr.bf16.mxu0 %v900_v23 }
  0x97   :  { %818 = vmatpush3.bf16.msra.mxu0 %v869_v5 }
  0x98   :  { %819 = vmatprep.subr.bf16.mxu0 %v900_v23 }
  0x9b   :  { %820 = vmatpush3.bf16.msra.mxu0 %v870_v6 }
  0x9c   :  { %821 = vmatprep.subr.bf16.mxu0 %v900_v23 }
  0x9f   :  { %822 = vmatpush3.bf16.msra.mxu0 %v871_v7 }
  0xa0   :  { %823 = vmatprep.subr.bf16.mxu0 %v900_v23 }
  0xa3   :  { %824 = vmatpush3.bf16.msra.mxu0 %v872_v8 }
  0xa4   :  { %825 = vmatprep.subr.bf16.mxu0 %v900_v23 }
  0xa7   :  { %826 = vmatpush3.bf16.msra.mxu0 %v873_v9 }
 0x15d   :  { %v777_v25 = vpop.f32.mrb[0].mxu0 }
 0x15e   :  { %v176_v26 = vrot.slane %v777_v25, 1  ;;  %v329_v27 = vrot.slane %v777_v25, 2  ;;  %v154_v28 = vpop.f32.mrb[1].mxu0  ;;  %v416_v29 = vrot.slane %v777_v25, 3 }
 0x15f   :  { %v175_v30 = vrot.slane %v154_v28, 1  ;;  %v328_v31 = vrot.slane %v154_v28, 2  ;;  %v415_v32 = vrot.slane %v154_v28, 3  ;;  %v778_v33 = vpop.f32.mrb[2].mxu0 }
 0x160   :  { %v170_v34 = vpack.c.bf16 %v778_v33, %v777_v25  ;;  %v178_v35 = vrot.slane %v778_v33, 1  ;;  %v331_v36 = vrot.slane %v778_v33, 2  ;;  %v418_v37 = vrot.slane %v778_v33, 3  ;;  %v157_v38 = vpop.f32.mrb[3].mxu0 }
 0x161   :  { %v169_v39 = vpack.c.bf16 %v157_v38, %v154_v28  ;;  %v177_v40 = vrot.slane %v157_v38, 1  ;;  %v330_v41 = vrot.slane %v157_v38, 2  ;;  %v417_v42 = vrot.slane %v157_v38, 3 }
 0x162   :  { %v334_v43 = vsel %vm332_vm6, %v329_v27, %v331_v36  ;;  %v336_v44 = vsel %vm332_vm6, %v331_v36, %v329_v27  ;;  %v421_v45 = vsel %vm419_vm7, %v416_v29, %v418_v37  ;;  %v423_v46 = vsel %vm419_vm7, %v418_v37, %v416_v29 }
 0x163   :  { %v338_v47 = vpack.c.bf16 %v336_v44, %v334_v43  ;;  %v425_v48 = vpack.c.bf16 %v423_v46, %v421_v45  ;;  %v182_v49 = vsel %vm181_vm8, %v175_v30, %v177_v40  ;;  %v184_v50 = vsel %vm181_vm8, %v177_v40, %v175_v30 }
 0x164   :  { %v186_v51 = vpack.c.bf16 %v184_v50, %v182_v49  ;;  %v183_v52 = vsel %vm181_vm8, %v176_v26, %v178_v35  ;;  %v185_v53 = vsel %vm181_vm8, %v178_v35, %v176_v26  ;;  %v333_v54 = vsel %vm332_vm6, %v328_v31, %v330_v41  ;;  %v715_v49 = vld [vmem:[%s1086_s6] ss:$0 sm:$0xff] }
 0x165   :  { %v187_v55 = vpack.c.bf16 %v185_v53, %v183_v52  ;;  %v335_v57 = vsel %vm332_vm6, %v330_v41, %v328_v31  ;;  %v420_v58 = vsel %vm419_vm7, %v415_v32, %v417_v42  ;;  %v422_v59 = vsel %vm419_vm7, %v417_v42, %v415_v32 }
 0x166   :  { %783 = vmatprep.mubr.msk.bf16.mxu1 %vm205_vm9, %v186_v51  ;;  %v337_v60 = vpack.c.bf16 %v335_v57, %v333_v54  ;;  %v424_v61 = vpack.c.bf16 %v422_v59, %v420_v58 }
 0x167   :  { %784 = vmatmul.mubr.msk.bf16.vlgmr.msra.gmra.mrb[0].mxu1 %vm205_vm9, %v187_v55 }
 0x168   :  { %788 = vmatpush3.bf16.msra.mxu1 %v860_v22  ;;  %791 = vmatprep.mubr.msk.bf16.mxu1 %vm205_vm9, %v169_v39 }
 0x169   :  { %789 = vmatprep.subr.bf16.mxu1 %v861_v56 }
 0x16c   :  { %790 = vmatpush3.bf16.msra.mxu1 %v861_v56 }
 0x16d   :  { %795 = vmatprep.subr.bf16.mxu1 %v862_v62 }
 0x173   :  { %792 = vmatmul.mubr.msk.bf16.vlgmr.msra.gmra.mrb[0].mxu1 %vm205_vm9, %v170_v34 }
 0x174   :  { %796 = vmatpush3.bf16.msra.mxu1 %v862_v62  ;;  %799 = vmatprep.mubr.msk.bf16.mxu1 %vm205_vm9, %v337_v60 }
 0x175   :  { %797 = vmatprep.subr.bf16.mxu1 %v863_v63 }
 0x178   :  { %798 = vmatpush3.bf16.msra.mxu1 %v863_v63 }
 0x179   :  { %803 = vmatprep.subr.bf16.mxu1 %v864_v0 }
 0x17f   :  { %800 = vmatmul.mubr.msk.bf16.vlgmr.msra.gmra.mrb[0].mxu1 %vm205_vm9, %v338_v47 }
 0x180   :  { %804 = vmatpush3.bf16.msra.mxu1 %v864_v0  ;;  %807 = vmatprep.mubr.msk.bf16.mxu1 %vm205_vm9, %v424_v61 }
 0x181   :  { %805 = vmatprep.subr.bf16.mxu1 %v865_v1 }
 0x184   :  { %806 = vmatpush3.bf16.msra.mxu1 %v865_v1 }
 0x18b   :  { %808 = vmatmul.mubr.msk.bf16.vlgmr.msra.gmra.mrb[0].mxu1 %vm205_vm9, %v425_v48 }
 0x25e   :  { %v809_v11 = vpop.f32.mrb[0].mxu1 }
 0x25f   :  { %v511_v12 = vadd.f32 %v809_v11, %v714_v10  ;;  %v483_v13 = vpop.f32.mrb[1].mxu1 }
 0x260   :  { %v509_v14 = vadd.f32 %v714_v10, %v483_v13  ;;  %v810_v15 = vpop.f32.mrb[2].mxu1 }
 0x261   :  { %v515_v16 = vmax.f32 %v511_v12, 0.0  ;;  %v512_v17 = vadd.f32 %v810_v15, %v714_v10  ;;  %v486_v18 = vpop.f32.mrb[3].mxu1 }
 0x262   :  { %v513_v20 = vmax.f32 %v509_v14, 0.0  ;;  %v510_v22 = vadd.f32 %v714_v10, %v486_v18 }
 0x263   :  { %v516_v23 = vmax.f32 %v512_v17, 0.0  ;;  %v521_v25 = vmul.f32 %v517_v19, %v515_v16 }
 0x264   :  { %v514_v24 = vmax.f32 %v510_v22, 0.0  ;;  %v519_v27 = vmul.f32 %v517_v19, %v513_v20 }
 0x265   :  { %v522_v26 = vmul.f32 %v518_v21, %v516_v23 }
 0x266   :  { %v520_v28 = vmul.f32 %v518_v21, %v514_v24 }
 0x267   :  { %v530_v29 = vmax.f32 %v521_v25, %v522_v26 }
 0x268   :  { %v523_v30 = vmax.f32 %v519_v27, %v520_v28 }
 0x269   :  { %v531_v31 = vrot.slane %v530_v29, 4 }
 0x26a   :  { %v524_v32 = vrot.slane %v523_v30, 4 }
 0x26b   :  { %v532_v33 = vmax.f32 %v530_v29, %v531_v31 }
 0x26c   :  { %v525_v34 = vmax.f32 %v523_v30, %v524_v32 }
 0x26d   :  { %v533_v35 = vrot.slane %v532_v33, 2 }
 0x26e   :  { %v526_v36 = vrot.slane %v525_v34, 2 }
 0x26f   :  { %v534_v37 = vmax.f32 %v532_v33, %v533_v35 }
 0x270   :  { %v527_v38 = vmax.f32 %v525_v34, %v526_v36 }
 0x271   :  { %v535_v39 = vrot.slane %v534_v37, 1 }
 0x272   :  { %v528_v40 = vrot.slane %v527_v38, 1 }
 0x273   :  { %v536_v41 = vmax.f32 %v534_v37, %v535_v39 }
 0x274   :  { %v529_v42 = vmax.f32 %v527_v38, %v528_v40 }
 0x275   :  { %v538_v43 = vpack.c.bf16 %v536_v41, %v536_v41 }
 0x276   :  { %v537_v44 = vpack.c.bf16 %v529_v42, %v529_v42 }
 0x277   :  { %v565_v45 = vunpack.c.l.b16 %v538_v43 }
 0x278   :  { %v564_v46 = vunpack.c.l.b16 %v537_v44 }
 0x27a   :  { %v567_v47 = vsel %vm566_vm11, %v565_v45, %v564_v46 }
 0x27b   :  { %v568_v48 = vpack.c.b16 %v567_v47, %v567_v47 }
 0x27d   :  { %828 = vmatmul.mubr.bf16.vlgmr.msra.gmra.mrb[4].mxu0 %v568_v48 }
 0x350   :  { %v652_v50 = vpop.f32.mrb[4].mxu0 }
 0x351   :  { %v653_v51 = vadd.f32 %v715_v49, %v652_v50  ;;  %v829_v52 = vpop.f32.mrb[5].mxu0 }
 0x352   :  { %v655_v53 = vpop.f32.mrb[6].mxu0 }
 0x353   :  { %v830_v54 = vpop.f32.mrb[7].mxu0  ;;  %659 = vst.msk [vmem:[#allocation2] sm:$0x3] %vm658_vm12, %v653_v51 }
 0x354   :  { %885 = shalt.err (!%p882_p4)
}
 0x355   :  { %s886_s6 = scalar_lea.hbm %s1087_s7, 32 }
 0x356   :  { %p887_p5 = scmp.ne.s32.totalorder %s1087_s7, %s886_s6  ;;  %p890_p6 = scmp.lt.u32.totalorder %s886_s6, %s1087_s7 }
 0x358   :  { %p892_p7 = pnand %p890_p6, %p887_p5 }
 0x35a   :  { %895 = shalt.err (!%p892_p7)
}
 0x35b   :  { %669 = dma.vmem_to_hbm [thread:$0]  %s667_s12, 32, %s1087_s7, [#allocation3]  }
 0x35c   :  { %896 = dma.done.wait [#allocation3], 32  }
 0x35d   :  { %897 = vsyncadd [#allocation3], 4294967264 }
 0x35e   :  { %673 = vsyncpa [#allocation3], 1 }

</bundles_post_ra>
